<compile_context>
chip_gen: v7x
topology: tpu7x:2x2x1
jax: 0.10.0
libtpu: 0.0.40
codegen_flags: <defaults>
</compile_context>

<pallas_src>
import functools
from typing import NamedTuple

import jax
import jax.numpy as jnp
from jax import lax
from jax.experimental import pallas as pl
from jax.experimental.pallas import tpu as pltpu


def _round_up(x, m):
    return (x + m - 1) // m * m


class Policy2Params(NamedTuple):
    w1: jax.Array   # (nin, hidden), f32 or bf16
    b1: jax.Array   # (1, hidden),   f32
    wac: jax.Array  # (hidden, 128)  fused [actor | critic | zeros] head, f32 or bf16
    bac: jax.Array  # (1, 128)       fused head bias, f32
    nout: int       # number of actions (static)


def prepare_params(w1, b1, wa, ba, wc, bc, *, use_bf16_matmul=False):
    """One-time parameter packing (hoisted out of the per-call forward path)."""
    nin, hidden = w1.shape
    nout = wa.shape[1]
    head_w = 128  # full lane width -> single unmasked MXU pass for the fused head
    assert nout + 1 <= head_w

    wac = jnp.zeros((hidden, head_w), jnp.float32)
    wac = wac.at[:, :nout].set(wa.astype(jnp.float32))
    wac = wac.at[:, nout:nout + 1].set(wc.astype(jnp.float32))
    bac = jnp.zeros((1, head_w), jnp.float32)
    bac = bac.at[:, :nout].set(ba.reshape(1, nout).astype(jnp.float32))
    bac = bac.at[:, nout:nout + 1].set(bc.reshape(1, 1).astype(jnp.float32))

    mm_dtype = jnp.bfloat16 if use_bf16_matmul else jnp.float32
    return Policy2Params(
        w1=w1.astype(mm_dtype),
        b1=b1.reshape(1, hidden).astype(jnp.float32),
        wac=wac.astype(mm_dtype),
        bac=bac,
        nout=int(nout),
    )


def _policy2_kernel(x_ref, w1_ref, b1_ref, wac_ref, bac_ref,
                    prob_ref, val_ref, *, nout):
    w1 = w1_ref[...]
    wac = wac_ref[...]
    x = x_ref[...].astype(w1.dtype)   # no-op when dtypes already match

    # fc1 + ReLU: MXU matmul (K = natural feature dim) with f32 accumulation.
    h = jnp.dot(x, w1, preferred_element_type=jnp.float32) + b1_ref[...]
    h = jnp.maximum(h, 0.0)

    # Fused actor+critic head: one MXU pass over the lane-dense (hidden, 128) weight.
    packed = jnp.dot(h.astype(wac.dtype), wac,
                     preferred_element_type=jnp.float32) + bac_ref[...]

    # Lanes [0:nout] are actor logits, lane nout is the critic value.
    lane = lax.broadcasted_iota(jnp.int32, packed.shape, 1)
    is_logit = lane < nout

    # Numerically stable softmax over the logit lanes only.
    logits = jnp.where(is_logit, packed, -jnp.inf)
    m = jnp.max(logits, axis=-1, keepdims=True)
    e = jnp.exp(logits - m)                    # masked lanes -> exp(-inf) = 0
    denom = jnp.sum(e, axis=-1, keepdims=True)
    r = pl.reciprocal(denom, approx=True)      # EUP slot (nearly free)
    r = r * (2.0 - denom * r)                  # one Newton step -> ~f32 exact
    probs = e * r

    # Compact stores: only the nout+1 useful lanes ever reach HBM.
    prob_ref[...] = probs[:, :nout].astype(prob_ref.dtype)
    val_ref[...] = packed[:, nout:nout + 1].astype(val_ref.dtype)


def policy2_forward(x, params: Policy2Params, *, block_b=1024):
    """Returns (action_prob (B, nout), state_values (B, 1)) matching Policy2.forward."""
    B, nin = x.shape
    hidden = params.w1.shape[1]
    head_w = params.wac.shape[1]
    nout = params.nout

    if not jnp.issubdtype(x.dtype, jnp.floating):
        x = x.astype(jnp.float32)

    # Batch tile: multiple of 8 sublanes, no wrapper-side row padding (Pallas masks
    # the partial last block), and >= 2 grid blocks whenever B > 8 so the
    # "parallel" axis can shard across v7x's two TensorCores.
    if B <= 8:
        tb = 8
    else:
        tb = min(block_b, _round_up((B + 1) // 2, 8))
    grid = (pl.cdiv(B, tb),)

    kernel = functools.partial(_policy2_kernel, nout=nout)

    probs, value = pl.pallas_call(
        kernel,
        out_shape=(jax.ShapeDtypeStruct((B, nout), jnp.float32),
                   jax.ShapeDtypeStruct((B, 1), jnp.float32)),
        grid_spec=pltpu.PrefetchScalarGridSpec(
            num_scalar_prefetch=0,
            grid=grid,
            in_specs=[
                pl.BlockSpec((tb, nin), lambda i: (i, 0)),        # x: tiled over batch
                pl.BlockSpec((nin, hidden), lambda i: (0, 0)),    # W1: VMEM-resident
                pl.BlockSpec((1, hidden), lambda i: (0, 0)),      # b1
                pl.BlockSpec((hidden, head_w), lambda i: (0, 0)), # fused head weight
                pl.BlockSpec((1, head_w), lambda i: (0, 0)),      # fused head bias
            ],
            out_specs=[
                pl.BlockSpec((tb, nout), lambda i: (i, 0)),       # action probs
                pl.BlockSpec((tb, 1), lambda i: (i, 0)),          # state value
            ],
        ),
        compiler_params=pltpu.CompilerParams(
            dimension_semantics=("parallel",)),
    )(x, params.w1, params.b1, params.wac, params.bac)
    return probs, value


def init_params(key, ninputs, noutputs, hidden=128):
    """Deterministic nn.Linear-style init: U(-1/sqrt(fan_in), 1/sqrt(fan_in))."""
    ks = jax.random.split(key, 6)

    def lin(kw, kb, fan_in, fan_out):
        bound = 1.0 / jnp.sqrt(float(fan_in))
        w = jax.random.uniform(kw, (fan_in, fan_out), jnp.float32, -bound, bound)
        b = jax.random.uniform(kb, (1, fan_out), jnp.float32, -bound, bound)
        return w, b

    w1, b1 = lin(ks[0], ks[1], ninputs, hidden)
    wa, ba = lin(ks[2], ks[3], hidden, noutputs)
    wc, bc = lin(ks[4], ks[5], hidden, 1)
    return w1, b1, wa, ba, wc, bc


if __name__ == "__main__":
    # Minipong(level=3, size=5) observation space ~ 3*5*5 = 75 features; 3 actions.
    B, NIN, NOUT = 2, 75, 3

    key = jax.random.PRNGKey(0)
    kx, kp = jax.random.split(key)
    x = jax.random.normal(kx, (B, NIN), dtype=jnp.float32)
    raw = init_params(kp, NIN, NOUT)

    # Pure-JAX reference (f32, highest precision matmuls).
    w1, b1, wa, ba, wc, bc = raw
    hp = jax.lax.Precision.HIGHEST
    h = jnp.maximum(jnp.dot(x, w1, precision=hp) + b1, 0.0)
    ref_probs = jax.nn.softmax(jnp.dot(h, wa, precision=hp) + ba, axis=1)
    ref_vals = jnp.dot(h, wc, precision=hp) + bc

    # ---- f32 path (exact parity with the torch module)
    params = prepare_params(*raw)                 # one-time packing, reused per call
    probs, values = policy2_forward(x, params)
    jax.block_until_ready((probs, values))

    assert probs.shape == (B, NOUT) and values.shape == (B, 1)
    assert jnp.allclose(jnp.sum(probs, axis=1), 1.0, atol=1e-5)
    assert jnp.allclose(probs, ref_probs, atol=1e-3, rtol=1e-3)
    assert jnp.allclose(values, ref_vals, atol=1e-3, rtol=1e-3)

    # ---- bf16 MXU path (f32 accumulation), validated with a looser tolerance
    params_bf16 = prepare_params(*raw, use_bf16_matmul=True)
    probs16, values16 = policy2_forward(x, params_bf16)
    jax.block_until_ready((probs16, values16))

    assert jnp.allclose(jnp.sum(probs16, axis=1), 1.0, atol=1e-3)
    assert jnp.allclose(probs16, ref_probs, atol=3e-2, rtol=3e-2)
    assert jnp.allclose(values16, ref_vals, atol=3e-2, rtol=3e-2)

    # TODO(synk): select_action (Categorical sampling) and update() (Adam + returns
    # normalization) are host/training logic, not part of the forward kernel.
    print("KERNEL_OK")
</pallas_src>

<mosaic_0001>
module attributes {stable_mosaic.version = 11 : i64} {
  func.func @_policy2_kernel(%arg0: i32, %arg1: memref<8x75xf32, #tpu.memory_space<vmem>>, %arg2: memref<75x128xf32, #tpu.memory_space<vmem>>, %arg3: memref<1x128xf32, #tpu.memory_space<vmem>>, %arg4: memref<128x128xf32, #tpu.memory_space<vmem>>, %arg5: memref<1x128xf32, #tpu.memory_space<vmem>>, %arg6: memref<8x3xf32, #tpu.memory_space<vmem>>, %arg7: memref<8x1xf32, #tpu.memory_space<vmem>>) attributes {dimension_semantics = [#tpu.dimension_semantics<parallel>], iteration_bounds = array<i64: 1>, scalar_prefetch = 0 : i64, scratch_operands = 0 : i64, tpu.core_type = #tpu.core_type<tc>, window_params = [{transform_indices = @transform_0, window_bounds = array<i64: 8, 75>}, {pipeline_mode = #tpu.pipeline_mode<synchronous>, transform_indices = @transform_1, window_bounds = array<i64: 75, 128>}, {pipeline_mode = #tpu.pipeline_mode<synchronous>, transform_indices = @transform_2, window_bounds = array<i64: 1, 128>}, {pipeline_mode = #tpu.pipeline_mode<synchronous>, transform_indices = @transform_3, window_bounds = array<i64: 128, 128>}, {pipeline_mode = #tpu.pipeline_mode<synchronous>, transform_indices = @transform_4, window_bounds = array<i64: 1, 128>}, {transform_indices = @transform_5, window_bounds = array<i64: 8, 3>}, {transform_indices = @transform_6, window_bounds = array<i64: 8, 1>}]} {
    %c0 = arith.constant 0 : index
    %c0_0 = arith.constant 0 : index
    %0 = vector.load %arg2[%c0, %c0_0] : memref<75x128xf32, #tpu.memory_space<vmem>>, vector<75x128xf32>
    %c0_1 = arith.constant 0 : index
    %c0_2 = arith.constant 0 : index
    %1 = vector.load %arg4[%c0_1, %c0_2] : memref<128x128xf32, #tpu.memory_space<vmem>>, vector<128x128xf32>
    %c0_3 = arith.constant 0 : index
    %c0_4 = arith.constant 0 : index
    %2 = vector.load %arg1[%c0_3, %c0_4] : memref<8x75xf32, #tpu.memory_space<vmem>>, vector<8x75xf32>
    %cst = arith.constant dense<0.000000e+00> : vector<8x128xf32>
    %3 = tpu.matmul %2, %0, %cst {dimension_numbers = #tpu.dot_dimension_numbers<[1], [0], [0], [1], [0, 0, 1, 1], [], []>} : vector<8x75xf32>, vector<75x128xf32>, vector<8x128xf32> -> vector<8x128xf32>
    %c0_5 = arith.constant 0 : index
    %c0_6 = arith.constant 0 : index
    %4 = vector.load %arg3[%c0_5, %c0_6] : memref<1x128xf32, #tpu.memory_space<vmem>>, vector<1x128xf32>
    %5 = vector.broadcast %4 : vector<1x128xf32> to vector<8x128xf32>
    %6 = arith.addf %3, %5 : vector<8x128xf32>
    %cst_7 = arith.constant 0.000000e+00 : f32
    %7 = vector.broadcast %cst_7 : f32 to vector<8x128xf32>
    %8 = arith.maximumf %6, %7 : vector<8x128xf32>
    %cst_8 = arith.constant dense<0.000000e+00> : vector<8x128xf32>
    %9 = tpu.matmul %8, %1, %cst_8 {dimension_numbers = #tpu.dot_dimension_numbers<[1], [0], [0], [1], [0, 0, 1, 1], [], []>} : vector<8x128xf32>, vector<128x128xf32>, vector<8x128xf32> -> vector<8x128xf32>
    %c0_9 = arith.constant 0 : index
    %c0_10 = arith.constant 0 : index
    %10 = vector.load %arg5[%c0_9, %c0_10] : memref<1x128xf32, #tpu.memory_space<vmem>>, vector<1x128xf32>
    %11 = vector.broadcast %10 : vector<1x128xf32> to vector<8x128xf32>
    %12 = arith.addf %9, %11 : vector<8x128xf32>
    %13 = tpu.iota {dimensions = array<i32: 1>} : vector<8x128xi32>
    %c3_i32 = arith.constant 3 : i32
    %14 = vector.broadcast %c3_i32 : i32 to vector<8x128xi32>
    %15 = arith.cmpi slt, %13, %14 : vector<8x128xi32>
    %cst_11 = arith.constant 0xFF800000 : f32
    %16 = vector.broadcast %cst_11 : f32 to vector<8x128xf32>
    %17 = arith.select %15, %12, %16 : vector<8x128xi1>, vector<8x128xf32>
    %cst_12 = arith.constant dense<0xFF800000> : vector<8xf32>
    %18 = vector.multi_reduction <maximumf>, %17, %cst_12 [1] : vector<8x128xf32> to vector<8xf32>
    %19 = vector.shape_cast %18 : vector<8xf32> to vector<8x1xf32>
    %20 = vector.broadcast %19 : vector<8x1xf32> to vector<8x128xf32>
    %21 = arith.subf %17, %20 : vector<8x128xf32>
    %22 = math.exp %21 : vector<8x128xf32>
    %cst_13 = arith.constant dense<0.000000e+00> : vector<8xf32>
    %23 = vector.multi_reduction <add>, %22, %cst_13 [1] : vector<8x128xf32> to vector<8xf32>
    %24 = vector.shape_cast %23 : vector<8xf32> to vector<8x1xf32>
    %25 = tpu.reciprocal %24 {approx = true} : vector<8x1xf32> -> vector<8x1xf32>
    %26 = arith.mulf %24, %25 : vector<8x1xf32>
    %cst_14 = arith.constant 2.000000e+00 : f32
    %27 = vector.broadcast %cst_14 : f32 to vector<8x1xf32>
    %28 = arith.subf %27, %26 : vector<8x1xf32>
    %29 = arith.mulf %25, %28 : vector<8x1xf32>
    %30 = vector.broadcast %29 : vector<8x1xf32> to vector<8x128xf32>
    %31 = arith.mulf %22, %30 : vector<8x128xf32>
    %32 = vector.extract_strided_slice %31 {offsets = [0, 0], sizes = [8, 3], strides = [1, 1]} : vector<8x128xf32> to vector<8x3xf32>
    %c0_15 = arith.constant 0 : index
    %c0_16 = arith.constant 0 : index
    %33 = vector.load %arg6[%c0_15, %c0_16] : memref<8x3xf32, #tpu.memory_space<vmem>>, vector<8x3xf32>
    tpu.vector_store %arg6[%c0_15, %c0_16], %32 {strides = array<i32>} : memref<8x3xf32, #tpu.memory_space<vmem>>, vector<8x3xf32>,
    %34 = vector.extract_strided_slice %12 {offsets = [0, 3], sizes = [8, 1], strides = [1, 1]} : vector<8x128xf32> to vector<8x1xf32>
    %c0_17 = arith.constant 0 : index
    %c0_18 = arith.constant 0 : index
    %35 = vector.load %arg7[%c0_17, %c0_18] : memref<8x1xf32, #tpu.memory_space<vmem>>, vector<8x1xf32>
    tpu.vector_store %arg7[%c0_17, %c0_18], %34 {strides = array<i32>} : memref<8x1xf32, #tpu.memory_space<vmem>>, vector<8x1xf32>,
    return
  }
  func.func @transform_0(%arg0: i32) -> (i32, i32) {
    %c0_i32 = arith.constant 0 : i32
    %c0_i32_0 = arith.constant 0 : i32
    return %arg0, %c0_i32 : i32, i32
  }
  func.func @transform_1(%arg0: i32) -> (i32, i32) {
    %c0_i32 = arith.constant 0 : i32
    %c0_i32_0 = arith.constant 0 : i32
    %c0_i32_1 = arith.constant 0 : i32
    return %c0_i32, %c0_i32_0 : i32, i32
  }
  func.func @transform_2(%arg0: i32) -> (i32, i32) {
    %c0_i32 = arith.constant 0 : i32
    %c0_i32_0 = arith.constant 0 : i32
    %c0_i32_1 = arith.constant 0 : i32
    return %c0_i32, %c0_i32_0 : i32, i32
  }
  func.func @transform_3(%arg0: i32) -> (i32, i32) {
    %c0_i32 = arith.constant 0 : i32
    %c0_i32_0 = arith.constant 0 : i32
    %c0_i32_1 = arith.constant 0 : i32
    return %c0_i32, %c0_i32_0 : i32, i32
  }
  func.func @transform_4(%arg0: i32) -> (i32, i32) {
    %c0_i32 = arith.constant 0 : i32
    %c0_i32_0 = arith.constant 0 : i32
    %c0_i32_1 = arith.constant 0 : i32
    return %c0_i32, %c0_i32_0 : i32, i32
  }
  func.func @transform_5(%arg0: i32) -> (i32, i32) {
    %c0_i32 = arith.constant 0 : i32
    %c0_i32_0 = arith.constant 0 : i32
    return %arg0, %c0_i32 : i32, i32
  }
  func.func @transform_6(%arg0: i32) -> (i32, i32) {
    %c0_i32 = arith.constant 0 : i32
    %c0_i32_0 = arith.constant 0 : i32
    return %arg0, %c0_i32 : i32, i32
  }
}

</mosaic_0001>

<bundles_post_ra>
// kernel: tpu_custom_call.1
= control target key start
LH: loop header
LB: loop body
LE: loop exit
PB: predicated region body
PF: predicated region fallthrough
CT: control target
= control target key end

     0   :  { %12 = vsyncpa [#allocation3], 0  ;;  %s706_s0 = inlined_call_operand.hbm [shape: f32[2,75], index: 0, kind: input, shape index: {}]   ;;  %s707_s1 = inlined_call_operand.hbm [shape: f32[75,128], index: 1, kind: input, shape index: {}]   ;;  %s708_s2 = inlined_call_operand.vmem [shape: f32[1,128], index: 2, kind: input, shape index: {}]   ;;  %s709_s3 = inlined_call_operand.hbm [shape: f32[128,128], index: 3, kind: input, shape index: {}]   ;;  %s710_s4 = inlined_call_operand.vmem [shape: f32[1,128], index: 4, kind: input, shape index: {}]   ;;  %s711_s5 = inlined_call_operand.hbm [shape: f32[2,3], index: 5, kind: output, shape index: {0}]   ;;  %s712_s6 = inlined_call_operand.vmem [shape: f32[2,1], index: 6, kind: output, shape index: {1}]  }
   0x1   :  { %13 = vsyncpa [#allocation6], 0 }
   0x2   :  { %14 = vsyncpa [#allocation4], 0 }
   0x3   :  { %19 = vsyncadd [#allocation3], 96  ;;  %s576_s21 = smov [#allocation5]   ;;  %s482_s25 = scalar_lea.hbm %s707_s1, 1280 }
   0x4   :  { %s32_s22 = sshll.u32 %s576_s21, 4  ;;  %p483_p0 = scmp.ne.s32.totalorder %s707_s1, %s482_s25  ;;  %s33_s22 = int_to_ptr.vmem [resolvable:$true] %s32_s22 }
   0x5   :  { %p486_p1 = scmp.lt.u32.totalorder %s482_s25, %s707_s1 }
   0x7   :  { %p488_p2 = pnand %p486_p1, %p483_p0 }
   0x9   :  { %491 = shalt.err (!%p488_p2)
}
   0xa   :  { %s492_s30 = scalar_lea.vmem %s33_s22, 1280  ;;  %p497_p4 = scmp.lt.s32.totalorder %s33_s22, %s33_s22 }
   0xb   :  { %p493_p3 = scmp.ne.s32.totalorder %s33_s22, %s492_s30  ;;  %p498_p5 = scmp.lt.s32.totalorder %s492_s30, %s492_s30 }
   0xd   :  { %p499_p6 = por %p498_p5, %p497_p4 }
   0xf   :  { %p500_p7 = pnand %p499_p6, %p493_p3 }
  0x11   :  { %503 = shalt.err (!%p500_p7)
}
  0x12   :  { %s577_s7 = smov 128   ;;  %s578_s8 = smov 8  }
  0x13   :  { %38 = dma.hbm_to_vmem [thread:$0]  %s707_s1, 1280, %s33_s22, [#allocation6], %s577_s7, %s577_s7, %s578_s8  }
  0x14   :  { %s579_s11 = smov [#allocation2]   ;;  %s504_s15 = scalar_lea.hbm %s706_s0, 32 }
  0x15   :  { %s20_s12 = sshll.u32 %s579_s11, 4  ;;  %p505_p8 = scmp.ne.s32.totalorder %s706_s0, %s504_s15  ;;  %s21_s12 = int_to_ptr.vmem [resolvable:$true] %s20_s12 }
  0x16   :  { %p508_p9 = scmp.lt.u32.totalorder %s504_s15, %s706_s0 }
  0x18   :  { %p510_p10 = pnand %p508_p9, %p505_p8 }
  0x1a   :  { %513 = shalt.err (!%p510_p10)
}
  0x1b   :  { %s514_s20 = scalar_lea.vmem %s21_s12, 32  ;;  %s518_s1 = scalar_lea.vmem %s21_s12, 128 }
  0x1c   :  { %p515_p11 = scmp.ne.s32.totalorder %s21_s12, %s514_s20  ;;  %p519_p12 = scmp.lt.s32.totalorder %s21_s12, %s21_s12 }
  0x1d   :  { %p520_p13 = scmp.lt.s32.totalorder %s518_s1, %s514_s20 }
  0x1f   :  { %p521_p0 = por %p520_p13, %p519_p12 }
  0x21   :  { %p522_p1 = pnand %p521_p0, %p515_p11 }
  0x23   :  { %525 = shalt.err (!%p522_p1)
}
  0x24   :  { %s580_s21 = smov 32   ;;  %s581_s22 = smov 2  }
  0x25   :  { %26 = dma.hbm_to_vmem [thread:$0]  %s706_s0, 32, %s21_s12, [#allocation3], %s580_s21, %s580_s21, %s581_s22  }
  0x26   :  { %s582_s25 = smov [#allocation7]   ;;  %s526_s29 = scalar_lea.hbm %s709_s3, 2048 }
  0x27   :  { %s46_s26 = sshll.u32 %s582_s25, 4  ;;  %p527_p2 = scmp.ne.s32.totalorder %s709_s3, %s526_s29  ;;  %s47_s26 = int_to_ptr.vmem [resolvable:$true] %s46_s26 }
  0x28   :  { %p530_p3 = scmp.lt.u32.totalorder %s526_s29, %s709_s3 }
  0x2a   :  { %p532_p4 = pnand %p530_p3, %p527_p2 }
  0x2c   :  { %535 = shalt.err (!%p532_p4)
}
  0x2d   :  { %s536_s13 = scalar_lea.vmem %s47_s26, 2048  ;;  %p541_p6 = scmp.lt.s32.totalorder %s47_s26, %s47_s26 }
  0x2e   :  { %p537_p5 = scmp.ne.s32.totalorder %s47_s26, %s536_s13  ;;  %p542_p7 = scmp.lt.s32.totalorder %s536_s13, %s536_s13 }
  0x30   :  { %p543_p8 = por %p542_p7, %p541_p6 }
  0x32   :  { %p544_p9 = pnand %p543_p8, %p537_p5 }
  0x34   :  { %547 = shalt.err (!%p544_p9)
}
  0x35   :  { %52 = dma.hbm_to_vmem [thread:$0]  %s709_s3, 2048, %s47_s26, [#allocation6], %s577_s7, %s577_s7, %s578_s8  }
  0x36   :  { %570 = dma.done.wait [#allocation3], 128  }
  0x37   :  { %571 = vsyncadd [#allocation3], 4294967168 }
  0x38   :  { %572 = dma.done.wait [#allocation6], 3328  }
  0x39   :  { %573 = vsyncadd [#allocation6], 4294963968  ;;  %v583_v0 = vmov 0.0|0.0   ;;  %vm584_vm0 = vmmov 0   ;;  %v585_v1 = vmov 0.0   ;;  %v64_v2 = vld [vmem:[#allocation5] sm:$0xff]  ;;  %v254_v47 = vlaneseq }
  0x3a   :  { %425 = vmatprep.subr.bf16.mxu0 %v583_v0  ;;  %441 = vmatprep.subr.bf16.mxu1 %v583_v0  ;;  %v65_v3 = vld [vmem:[#allocation5 + $0x8] sm:$0xff]  ;;  %v66_v4 = vld [vmem:[#allocation5 + $0x10] sm:$0xff]  ;;  %v67_v6 = vld [vmem:[#allocation5 + $0x18] sm:$0xff]  ;;  %vm102_vm1 = vcmask 1042432   ;;  %vm586_vm2 = vmmov 1   ;;  %vm98_vm4 = vcmask 613376  }
  0x3b   :  { %387 = vmatprep.mubr.msk.f32.mxu0 %vm584_vm0, %v585_v1  ;;  %422 = vmatprep.mubr.msk.f32.mxu1 %vm584_vm0, %v585_v1  ;;  %v426_v5 = vpack.c.bf16 %v65_v3, %v64_v2  ;;  %v429_v7 = vpack.c.bf16 %v67_v6, %v66_v4  ;;  %v68_v8 = vld [vmem:[#allocation5 + $0x20] sm:$0xff]  ;;  %v69_v9 = vld [vmem:[#allocation5 + $0x28] sm:$0xff]  ;;  %v74_v10 = vld [vmem:[#allocation7] sm:$0xff]  ;;  %v255_v48 = vand.u32 127, %v254_v47  ;;  %s587_s15 = smov 125   ;;  %vm276_vm6 = vcmask 7168  }
  0x3c   :  { %v75_v11 = vld [vmem:[#allocation7 + $0x8] sm:$0xff]  ;;  %v76_v12 = vld [vmem:[#allocation7 + $0x10] sm:$0xff]  ;;  %v77_v13 = vld [vmem:[#allocation7 + $0x18] sm:$0xff]  ;;  %v432_v15 = vpack.c.bf16 %v69_v9, %v68_v8  ;;  %vm270_vm7 = vcmask 23552  }
  0x3d   :  { %427 = vmatpush3.bf16.msra.mxu0 %v426_v5  ;;  %v442_v14 = vpack.c.bf16 %v75_v11, %v74_v10  ;;  %v70_v16 = vld [vmem:[#allocation5 + $0x30] sm:$0xff]  ;;  %v445_v17 = vpack.c.bf16 %v77_v13, %v76_v12  ;;  %v71_v18 = vld [vmem:[#allocation5 + $0x38] sm:$0xff]  ;;  %v72_v22 = vld [vmem:[#allocation5 + $0x40] sm:$0xff]  ;;  %vm256_vm5 = vcmp.lt.s32.totalorder %v255_v48, 3 }
  0x3e   :  { %428 = vmatprep.subr.bf16.mxu0 %v583_v0  ;;  %v78_v19 = vld [vmem:[#allocation7 + $0x20] sm:$0xff]  ;;  %v79_v20 = vld [vmem:[#allocation7 + $0x28] sm:$0xff]  ;;  %v435_v21 = vpack.c.bf16 %v71_v18, %v70_v16  ;;  %v73_v24 = vld [vmem:[#allocation5 + $0x48] sm:$0x7] }
  0x3f   :  { %443 = vmatpush3.bf16.msra.mxu1 %v442_v14  ;;  %v448_v23 = vpack.c.bf16 %v79_v20, %v78_v19  ;;  %v80_v25 = vld [vmem:[#allocation7 + $0x30] sm:$0xff]  ;;  %v81_v26 = vld [vmem:[#allocation7 + $0x38] sm:$0xff]  ;;  %v438_v27 = vpack.c.bf16 %v73_v24, %v72_v22  ;;  %vm439_vm3 = vmpackc.low %vm102_vm1, %vm586_vm2 }
  0x40   :  { %444 = vmatprep.subr.bf16.mxu1 %v583_v0  ;;  %v451_v28 = vpack.c.bf16 %v81_v26, %v80_v25  ;;  %v82_v29 = vld [vmem:[#allocation7 + $0x40] sm:$0xff]  ;;  %v83_v30 = vld [vmem:[#allocation7 + $0x48] sm:$0xff]  ;;  %v84_v33 = vld [vmem:[#allocation7 + $0x50] sm:$0xff] }
  0x41   :  { %430 = vmatpush3.bf16.msra.mxu0 %v429_v7  ;;  %v90_v31 = vld [vmem:[#allocation2] sm:$0xff]  ;;  %v454_v32 = vpack.c.bf16 %v83_v30, %v82_v29  ;;  %v85_v34 = vld [vmem:[#allocation7 + $0x58] sm:$0xff]  ;;  %v86_v36 = vld [vmem:[#allocation7 + $0x60] sm:$0xff] }
  0x42   :  { %431 = vmatprep.subr.bf16.mxu0 %v583_v0  ;;  %v457_v35 = vpack.c.bf16 %v85_v34, %v84_v33  ;;  %v87_v37 = vld [vmem:[#allocation7 + $0x68] sm:$0xff]  ;;  %v88_v39 = vld [vmem:[#allocation7 + $0x70] sm:$0xff]  ;;  %v89_v40 = vld [vmem:[#allocation7 + $0x78] sm:$0xff] }
  0x43   :  { %446 = vmatpush3.bf16.msra.mxu1 %v445_v17  ;;  %v460_v38 = vpack.c.bf16 %v87_v37, %v86_v36  ;;  %v463_v41 = vpack.c.bf16 %v89_v40, %v88_v39  ;;  %v335_v42 = vld [vmem:[%s708_s2] ss:$0 sm:$0xff] }
  0x44   :  { %447 = vmatprep.subr.bf16.mxu1 %v583_v0  ;;  %v338_v49 = vld [vmem:[%s710_s4] ss:$0 sm:$0xff] }
  0x45   :  { %433 = vmatpush3.bf16.msra.mxu0 %v432_v15 }
  0x46   :  { %434 = vmatprep.subr.bf16.mxu0 %v583_v0 }
  0x47   :  { %449 = vmatpush3.bf16.msra.mxu1 %v448_v23 }
  0x48   :  { %450 = vmatprep.subr.bf16.mxu1 %v583_v0 }
  0x49   :  { %436 = vmatpush3.bf16.msra.mxu0 %v435_v21 }
  0x4a   :  { %437 = vmatprep.subr.bf16.mxu0 %v583_v0 }
  0x4b   :  { %452 = vmatpush3.bf16.msra.mxu1 %v451_v28 }
  0x4c   :  { %453 = vmatprep.subr.bf16.mxu1 %v583_v0 }
  0x4d   :  { %440 = vmatpush3.bf16.msk.msra.mxu0 %vm439_vm3, %v438_v27 }
  0x4f   :  { %455 = vmatpush3.bf16.msra.mxu1 %v454_v32 }
  0x50   :  { %388 = vmatmul.mubr.msk.f32.vlgmr.msra.gmra.mrb[0].mxu0 %vm98_vm4, %v90_v31  ;;  %456 = vmatprep.subr.bf16.mxu1 %v583_v0 }
  0x53   :  { %458 = vmatpush3.bf16.msra.mxu1 %v457_v35 }
  0x54   :  { %459 = vmatprep.subr.bf16.mxu1 %v583_v0 }
  0x57   :  { %461 = vmatpush3.bf16.msra.mxu1 %v460_v38 }
  0x58   :  { %462 = vmatprep.subr.bf16.mxu1 %v583_v0 }
  0x5b   :  { %464 = vmatpush3.bf16.msra.mxu1 %v463_v41 }
 0x123   :  { %v172_v43 = vpop.f32.mrb[0].mxu0 }
 0x124   :  { %v173_v44 = vadd.f32 %v335_v42, %v172_v43  ;;  %v389_v45 = vpop.f32.mrb[1].mxu0 }
 0x126   :  { %v176_v46 = vmax.f32 %v173_v44, 0.0 }
 0x128   :  { %423 = vmatmul.mubr.f32.vlgmr.msra.gmra.mrb[0].mxu1 %v176_v46 }
 0x1fb   :  { %v250_v50 = vpop.f32.mrb[0].mxu1 }
 0x1fc   :  { %v251_v51 = vadd.f32 %v338_v49, %v250_v50  ;;  %v424_v52 = vpop.f32.mrb[1].mxu1 }
 0x1fe   :  { %273 = vrot.lane.b32.xlu1 %v251_v51, %s587_s15  ;;  %v257_v53 = vsel %vm256_vm5, %v251_v51, -inf }
 0x1ff   :  { %258 = vmax.xlane.f32.xlu0 %v257_v53 }
 0x270   :  { %v274_v54 = vpop.permute.xlu1 %273 }
 0x271   :  { %277 = vst.msk [vmem:[#allocation9] sm:$0xff] %vm276_vm6, %v274_v54 }
 0x28c   :  { %v259_v55 = vpop.xlane.xlu0 %258 }
 0x28d   :  { %v260_v56 = vsub.f32 %v257_v53, %v259_v55 }
 0x28f   :  { %v261_v57 = vmul.f32 1.442695, %v260_v56 }
 0x291   :  { %478 = vpow2.f32 %v261_v57 }
 0x29b   :  { %v479_v58 = vpop.eup %478 }
 0x29c   :  { %263 = vadd.xlane.f32.xlu0 %v479_v58 }
 0x329   :  { %v264_v59 = vpop.xlane.xlu0 %263 }
 0x32a   :  { %480 = vrcp.f32 %v264_v59 }
 0x334   :  { %v481_v60 = vpop.eup %480 }
 0x335   :  { %v266_v61 = vmul.f32 %v481_v60, %v264_v59 }
 0x337   :  { %v267_v62 = vsub.f32 2.0, %v266_v61 }
 0x339   :  { %v268_v63 = vmul.f32 %v481_v60, %v267_v62 }
 0x33b   :  { %v269_v0 = vmul.f32 %v479_v58, %v268_v63 }
 0x33d   :  { %271 = vst.msk [vmem:[#allocation8] sm:$0xff] %vm270_vm7, %v269_v0 }
 0x33e   :  { %282 = vsyncadd [#allocation4], 96  ;;  %v307_v1 = vld [vmem:[#allocation9] sm:$0x3]  ;;  %s588_s2 = smov [#allocation8]  }
 0x33f   :  { %s283_s4 = sshll.u32 %s588_s2, 4  ;;  %308 = vst [vmem:[%s712_s6] sm:$0x3] %v307_v1  ;;  %s284_s4 = int_to_ptr.vmem [resolvable:$true] %s283_s4 }
 0x340   :  { %s548_s18 = scalar_lea.vmem %s284_s4, 32  ;;  %s552_s19 = scalar_lea.vmem %s284_s4, 128 }
 0x341   :  { %p549_p10 = scmp.ne.s32.totalorder %s284_s4, %s548_s18  ;;  %p553_p11 = scmp.lt.s32.totalorder %s284_s4, %s284_s4 }
 0x342   :  { %p554_p12 = scmp.lt.s32.totalorder %s552_s19, %s548_s18 }
 0x344   :  { %p555_p13 = por %p554_p12, %p553_p11 }
 0x346   :  { %p556_p0 = pnand %p555_p13, %p549_p10 }
 0x348   :  { %559 = shalt.err (!%p556_p0)
}
 0x349   :  { %s560_s23 = scalar_lea.hbm %s711_s5, 32 }
 0x34a   :  { %p561_p1 = scmp.ne.s32.totalorder %s711_s5, %s560_s23  ;;  %p564_p2 = scmp.lt.u32.totalorder %s560_s23, %s711_s5 }
 0x34c   :  { %p566_p3 = pnand %p564_p2, %p561_p1 }
 0x34e   :  { %569 = shalt.err (!%p566_p3)
}
 0x34f   :  { %289 = dma.vmem_to_hbm [thread:$0]  %s284_s4, 32, %s711_s5, [#allocation4], %s580_s21, %s580_s21, %s581_s22  }
 0x350   :  { %574 = dma.done.wait [#allocation4], 128  }
 0x351   :  { %575 = vsyncadd [#allocation4], 4294967168 }
 0x352   :  { %328 = vsyncpa [#allocation3], 1 }
 0x353   :  { %329 = vsyncpa [#allocation6], 1 }
 0x354   :  { %330 = vsyncpa [#allocation4], 1 }

</bundles_post_ra>
